<compile_context>
chip_gen: v7x
topology: tpu7x:2x2x1
jax: 0.10.0
libtpu: 0.0.40
codegen_flags: <defaults>
</compile_context>

<pallas_src>
import functools

import jax
import jax.numpy as jnp
from jax.experimental import pallas as pl
from jax.experimental.pallas import tpu as pltpu


def mapping_kernel(x_ref, w1t_ref, b1_ref, w2t_ref, b2_ref, w3t_ref, b3_ref,
                   out_ref):
    # x_ref:   (TB, Z)   row-tile of noise vectors (f32)
    # w1t_ref: (Z, H)    layer-1 weight, pre-transposed, bf16
    # b1_ref:  (1, H)    f32
    # w2t_ref: (H, H)    bf16
    # b2_ref:  (1, H)    f32
    # w3t_ref: (H, Wd)   bf16
    # b3_ref:  (1, Wd)   f32
    # out_ref: (TB, Wd)
    x = x_ref[...].astype(jnp.bfloat16)                                # (TB, Z)

    # Layer 1: bf16 x bf16 MXU dot, f32 accumulate, f32 epilogue.
    h = jnp.dot(x, w1t_ref[...], preferred_element_type=jnp.float32)
    h = jnp.maximum(h + b1_ref[...], 0.0)                              # (TB, H) f32

    # Layer 2.
    h = jnp.dot(h.astype(jnp.bfloat16), w2t_ref[...],
                preferred_element_type=jnp.float32)
    h = jnp.maximum(h + b2_ref[...], 0.0)                              # (TB, H) f32

    # Layer 3 (no ReLU).
    o = jnp.dot(h.astype(jnp.bfloat16), w3t_ref[...],
                preferred_element_type=jnp.float32)
    o = o + b3_ref[...]                                                # (TB, Wd) f32

    out_ref[...] = o.astype(out_ref.dtype)


def _round_up(x, m):
    return ((x + m - 1) // m) * m


def prepare_mapping_params(w1, b1, w2, b2, w3, b3):
    """One-time parameter prep (call at model init, NOT per forward pass).

    wi: (out_i, in_i) PyTorch nn.Linear layout; bi: (out_i,).
    Returns weights pre-transposed to MXU-ready (K, M) layout in bf16 and
    biases as (1, M) f32 rows.
    """
    return (
        w1.T.astype(jnp.bfloat16), b1.reshape(1, -1).astype(jnp.float32),
        w2.T.astype(jnp.bfloat16), b2.reshape(1, -1).astype(jnp.float32),
        w3.T.astype(jnp.bfloat16), b3.reshape(1, -1).astype(jnp.float32),
    )


@functools.partial(jax.jit, static_argnames=("block_n",))
def mapping_layers(noise, w1t, b1r, w2t, b2r, w3t, b3r, *, block_n=1024):
    """noise: (N, z_dim) f32; params as produced by prepare_mapping_params."""
    N, Z = noise.shape
    H = w1t.shape[1]
    Wd = w3t.shape[1]

    # Pad the batch only to a sublane multiple of 8 (cheap tail pad, no
    # full-array scatter copy, no rounding up to the row-tile size).
    n8 = _round_up(N, 8)
    noise_p = jnp.pad(noise, ((0, n8 - N), (0, 0))) if n8 != N else noise

    # Row-tile: capped at block_n, aligned to 8, and split so the grid has at
    # least 2 steps whenever there are >= 16 rows (keeps both v7x TCs busy).
    if n8 >= 16:
        tb = min(block_n, _round_up(pl.cdiv(n8, 2), 8))
    else:
        tb = n8
    grid = (pl.cdiv(n8, tb),)   # last block may be ragged; writes are masked

    resident = dict(pipeline_mode=pl.Buffered(1))  # grid-invariant -> 1 buffer

    out_p = pl.pallas_call(
        mapping_kernel,
        out_shape=jax.ShapeDtypeStruct((n8, Wd), noise.dtype),
        grid_spec=pltpu.PrefetchScalarGridSpec(
            num_scalar_prefetch=0,
            grid=grid,
            in_specs=[
                pl.BlockSpec((tb, Z), lambda i: (i, 0)),            # streamed rows
                pl.BlockSpec((Z, H), lambda i: (0, 0), **resident),  # resident weights
                pl.BlockSpec((1, H), lambda i: (0, 0), **resident),
                pl.BlockSpec((H, H), lambda i: (0, 0), **resident),
                pl.BlockSpec((1, H), lambda i: (0, 0), **resident),
                pl.BlockSpec((H, Wd), lambda i: (0, 0), **resident),
                pl.BlockSpec((1, Wd), lambda i: (0, 0), **resident),
            ],
            out_specs=pl.BlockSpec((tb, Wd), lambda i: (i, 0)),
        ),
        compiler_params=pltpu.CompilerParams(
            dimension_semantics=("parallel",)),
    )(noise_p, w1t, b1r, w2t, b2r, w3t, b3r)

    return out_p[:N]


def mapping_layers_reference(noise, w1, b1, w2, b2, w3, b3):
    """Pure-JAX f32 reference matching the PyTorch nn.Sequential forward."""
    h = jnp.maximum(noise @ w1.T + b1, 0.0)
    h = jnp.maximum(h @ w2.T + b2, 0.0)
    return h @ w3.T + b3


if __name__ == "__main__":
    N = 8          # n_samples
    Z_DIM = 128    # matches `z_dim = 128` in the spec file
    HIDDEN = 256
    W_DIM = 128

    key = jax.random.PRNGKey(0)
    k_n, k_w1, k_b1, k_w2, k_b2, k_w3, k_b3 = jax.random.split(key, 7)

    noise = jax.random.normal(k_n, (N, Z_DIM), dtype=jnp.float32)

    # PyTorch nn.Linear default init: U(-1/sqrt(fan_in), 1/sqrt(fan_in)).
    def linear_params(kw, kb, out_dim, in_dim):
        bound = 1.0 / (in_dim ** 0.5)
        w = jax.random.uniform(kw, (out_dim, in_dim), jnp.float32, -bound, bound)
        b = jax.random.uniform(kb, (out_dim,), jnp.float32, -bound, bound)
        return w, b

    w1, b1 = linear_params(k_w1, k_b1, HIDDEN, Z_DIM)
    w2, b2 = linear_params(k_w2, k_b2, HIDDEN, HIDDEN)
    w3, b3 = linear_params(k_w3, k_b3, W_DIM, HIDDEN)

    # One-time parameter prep (hoisted out of the per-call path).
    params = prepare_mapping_params(w1, b1, w2, b2, w3, b3)

    out = mapping_layers(noise, *params)
    out = jax.block_until_ready(out)

    ref = mapping_layers_reference(noise, w1, b1, w2, b2, w3, b3)
    assert out.shape == (N, W_DIM)
    # bf16 MXU operands with f32 accumulation -> relaxed tolerance vs f32 ref.
    assert jnp.allclose(out, ref, atol=5e-2, rtol=5e-2), "mismatch vs reference"

    print("KERNEL_OK")
</pallas_src>

<mosaic_0001>
module attributes {stable_mosaic.version = 11 : i64} {
  func.func @mapping_kernel(%arg0: i32, %arg1: memref<8x128xf32, #tpu.memory_space<vmem>>, %arg2: memref<128x256xbf16, #tpu.memory_space<vmem>>, %arg3: memref<1x256xf32, #tpu.memory_space<vmem>>, %arg4: memref<256x256xbf16, #tpu.memory_space<vmem>>, %arg5: memref<1x256xf32, #tpu.memory_space<vmem>>, %arg6: memref<256x128xbf16, #tpu.memory_space<vmem>>, %arg7: memref<1x128xf32, #tpu.memory_space<vmem>>, %arg8: memref<8x128xf32, #tpu.memory_space<vmem>>) attributes {dimension_semantics = [#tpu.dimension_semantics<parallel>], iteration_bounds = array<i64: 1>, scalar_prefetch = 0 : i64, scratch_operands = 0 : i64, tpu.core_type = #tpu.core_type<tc>, window_params = [{transform_indices = @transform_0, window_bounds = array<i64: 8, 128>}, {pipeline_mode = #tpu.pipeline_mode<synchronous>, transform_indices = @transform_1, window_bounds = array<i64: 128, 256>}, {pipeline_mode = #tpu.pipeline_mode<synchronous>, transform_indices = @transform_2, window_bounds = array<i64: 1, 256>}, {pipeline_mode = #tpu.pipeline_mode<synchronous>, transform_indices = @transform_3, window_bounds = array<i64: 256, 256>}, {pipeline_mode = #tpu.pipeline_mode<synchronous>, transform_indices = @transform_4, window_bounds = array<i64: 1, 256>}, {pipeline_mode = #tpu.pipeline_mode<synchronous>, transform_indices = @transform_5, window_bounds = array<i64: 256, 128>}, {pipeline_mode = #tpu.pipeline_mode<synchronous>, transform_indices = @transform_6, window_bounds = array<i64: 1, 128>}, {transform_indices = @transform_7, window_bounds = array<i64: 8, 128>}]} {
    %c0 = arith.constant 0 : index
    %c0_0 = arith.constant 0 : index
    %0 = vector.load %arg1[%c0, %c0_0] : memref<8x128xf32, #tpu.memory_space<vmem>>, vector<8x128xf32>
    %1 = arith.truncf %0 : vector<8x128xf32> to vector<8x128xbf16>
    %c0_1 = arith.constant 0 : index
    %c0_2 = arith.constant 0 : index
    %2 = vector.load %arg2[%c0_1, %c0_2] : memref<128x256xbf16, #tpu.memory_space<vmem>>, vector<128x256xbf16>
    %cst = arith.constant dense<0.000000e+00> : vector<8x256xf32>
    %3 = tpu.matmul %1, %2, %cst {dimension_numbers = #tpu.dot_dimension_numbers<[1], [0], [0], [1], [0, 0, 1, 1], [], []>} : vector<8x128xbf16>, vector<128x256xbf16>, vector<8x256xf32> -> vector<8x256xf32>
    %c0_3 = arith.constant 0 : index
    %c0_4 = arith.constant 0 : index
    %4 = vector.load %arg3[%c0_3, %c0_4] : memref<1x256xf32, #tpu.memory_space<vmem>>, vector<1x256xf32>
    %5 = vector.broadcast %4 : vector<1x256xf32> to vector<8x256xf32>
    %6 = arith.addf %3, %5 : vector<8x256xf32>
    %cst_5 = arith.constant 0.000000e+00 : f32
    %7 = vector.broadcast %cst_5 : f32 to vector<8x256xf32>
    %8 = arith.maximumf %6, %7 : vector<8x256xf32>
    %9 = arith.truncf %8 : vector<8x256xf32> to vector<8x256xbf16>
    %c0_6 = arith.constant 0 : index
    %c0_7 = arith.constant 0 : index
    %10 = vector.load %arg4[%c0_6, %c0_7] : memref<256x256xbf16, #tpu.memory_space<vmem>>, vector<256x256xbf16>
    %cst_8 = arith.constant dense<0.000000e+00> : vector<8x256xf32>
    %11 = tpu.matmul %9, %10, %cst_8 {dimension_numbers = #tpu.dot_dimension_numbers<[1], [0], [0], [1], [0, 0, 1, 1], [], []>} : vector<8x256xbf16>, vector<256x256xbf16>, vector<8x256xf32> -> vector<8x256xf32>
    %c0_9 = arith.constant 0 : index
    %c0_10 = arith.constant 0 : index
    %12 = vector.load %arg5[%c0_9, %c0_10] : memref<1x256xf32, #tpu.memory_space<vmem>>, vector<1x256xf32>
    %13 = vector.broadcast %12 : vector<1x256xf32> to vector<8x256xf32>
    %14 = arith.addf %11, %13 : vector<8x256xf32>
    %cst_11 = arith.constant 0.000000e+00 : f32
    %15 = vector.broadcast %cst_11 : f32 to vector<8x256xf32>
    %16 = arith.maximumf %14, %15 : vector<8x256xf32>
    %17 = arith.truncf %16 : vector<8x256xf32> to vector<8x256xbf16>
    %c0_12 = arith.constant 0 : index
    %c0_13 = arith.constant 0 : index
    %18 = vector.load %arg6[%c0_12, %c0_13] : memref<256x128xbf16, #tpu.memory_space<vmem>>, vector<256x128xbf16>
    %cst_14 = arith.constant dense<0.000000e+00> : vector<8x128xf32>
    %19 = tpu.matmul %17, %18, %cst_14 {dimension_numbers = #tpu.dot_dimension_numbers<[1], [0], [0], [1], [0, 0, 1, 1], [], []>} : vector<8x256xbf16>, vector<256x128xbf16>, vector<8x128xf32> -> vector<8x128xf32>
    %c0_15 = arith.constant 0 : index
    %c0_16 = arith.constant 0 : index
    %20 = vector.load %arg7[%c0_15, %c0_16] : memref<1x128xf32, #tpu.memory_space<vmem>>, vector<1x128xf32>
    %21 = vector.broadcast %20 : vector<1x128xf32> to vector<8x128xf32>
    %22 = arith.addf %19, %21 : vector<8x128xf32>
    %c0_17 = arith.constant 0 : index
    %c0_18 = arith.constant 0 : index
    %23 = vector.load %arg8[%c0_17, %c0_18] : memref<8x128xf32, #tpu.memory_space<vmem>>, vector<8x128xf32>
    tpu.vector_store %arg8[%c0_17, %c0_18], %22 {strides = array<i32>} : memref<8x128xf32, #tpu.memory_space<vmem>>, vector<8x128xf32>,
    return
  }
  func.func @transform_0(%arg0: i32) -> (i32, i32) {
    %c0_i32 = arith.constant 0 : i32
    %c0_i32_0 = arith.constant 0 : i32
    return %arg0, %c0_i32 : i32, i32
  }
  func.func @transform_1(%arg0: i32) -> (i32, i32) {
    %c0_i32 = arith.constant 0 : i32
    %c0_i32_0 = arith.constant 0 : i32
    %c0_i32_1 = arith.constant 0 : i32
    return %c0_i32, %c0_i32_0 : i32, i32
  }
  func.func @transform_2(%arg0: i32) -> (i32, i32) {
    %c0_i32 = arith.constant 0 : i32
    %c0_i32_0 = arith.constant 0 : i32
    %c0_i32_1 = arith.constant 0 : i32
    return %c0_i32, %c0_i32_0 : i32, i32
  }
  func.func @transform_3(%arg0: i32) -> (i32, i32) {
    %c0_i32 = arith.constant 0 : i32
    %c0_i32_0 = arith.constant 0 : i32
    %c0_i32_1 = arith.constant 0 : i32
    return %c0_i32, %c0_i32_0 : i32, i32
  }
  func.func @transform_4(%arg0: i32) -> (i32, i32) {
    %c0_i32 = arith.constant 0 : i32
    %c0_i32_0 = arith.constant 0 : i32
    %c0_i32_1 = arith.constant 0 : i32
    return %c0_i32, %c0_i32_0 : i32, i32
  }
  func.func @transform_5(%arg0: i32) -> (i32, i32) {
    %c0_i32 = arith.constant 0 : i32
    %c0_i32_0 = arith.constant 0 : i32
    %c0_i32_1 = arith.constant 0 : i32
    return %c0_i32, %c0_i32_0 : i32, i32
  }
  func.func @transform_6(%arg0: i32) -> (i32, i32) {
    %c0_i32 = arith.constant 0 : i32
    %c0_i32_0 = arith.constant 0 : i32
    %c0_i32_1 = arith.constant 0 : i32
    return %c0_i32, %c0_i32_0 : i32, i32
  }
  func.func @transform_7(%arg0: i32) -> (i32, i32) {
    %c0_i32 = arith.constant 0 : i32
    %c0_i32_0 = arith.constant 0 : i32
    return %arg0, %c0_i32 : i32, i32
  }
}

</mosaic_0001>

<bundles_post_ra>
// kernel: mapping_layers.1
= control target key start
LH: loop header
LB: loop body
LE: loop exit
PB: predicated region body
PF: predicated region fallthrough
CT: control target
= control target key end

     0   :  { %12 = vsyncpa [#allocation3], 0  ;;  %s1106_s0 = inlined_call_operand.hbm [shape: f32[8,128], index: 0, kind: input, shape index: {}]   ;;  %s1107_s1 = inlined_call_operand.hbm [shape: bf16[128,256], index: 1, kind: input, shape index: {}]   ;;  %s1108_s2 = inlined_call_operand.vmem [shape: f32[1,256], index: 2, kind: input, shape index: {}]   ;;  %s1109_s3 = inlined_call_operand.hbm [shape: bf16[256,256], index: 3, kind: input, shape index: {}]   ;;  %s1110_s4 = inlined_call_operand.vmem [shape: f32[1,256], index: 4, kind: input, shape index: {}]   ;;  %s1111_s5 = inlined_call_operand.hbm [shape: bf16[256,128], index: 5, kind: input, shape index: {}]   ;;  %s1112_s6 = inlined_call_operand.vmem [shape: f32[1,128], index: 6, kind: input, shape index: {}]   ;;  %s1113_s7 = inlined_call_operand.hbm [shape: f32[8,128], index: 7, kind: output, shape index: {}]  }
   0x1   :  { %13 = vsyncpa [#allocation6], 0 }
   0x2   :  { %14 = vsyncpa [#allocation9], 0 }
   0x3   :  { %15 = vsyncpa [#allocation4], 0  ;;  %s981_s24 = smov [#allocation5]   ;;  %s863_s28 = scalar_lea.hbm %s1107_s1, 2048 }
   0x4   :  { %s31_s25 = sshll.u32 %s981_s24, 4  ;;  %p864_p0 = scmp.ne.s32.totalorder %s1107_s1, %s863_s28  ;;  %s32_s25 = int_to_ptr.vmem [resolvable:$true] %s31_s25 }
   0x5   :  { %p867_p1 = scmp.lt.u32.totalorder %s863_s28, %s1107_s1 }
   0x7   :  { %p869_p2 = pnand %p867_p1, %p864_p0 }
   0x9   :  { %872 = shalt.err (!%p869_p2)
}
   0xa   :  { %s873_s10 = scalar_lea.vmem %s32_s25, 2048  ;;  %p878_p4 = scmp.lt.s32.totalorder %s32_s25, %s32_s25 }
   0xb   :  { %p874_p3 = scmp.ne.s32.totalorder %s32_s25, %s873_s10  ;;  %p879_p5 = scmp.lt.s32.totalorder %s873_s10, %s873_s10 }
   0xd   :  { %p880_p6 = por %p879_p5, %p878_p4 }
   0xf   :  { %p881_p7 = pnand %p880_p6, %p874_p3 }
  0x11   :  { %884 = shalt.err (!%p881_p7)
}
  0x12   :  { %s982_s11 = smov 128   ;;  %s983_s12 = smov 8  }
  0x13   :  { %37 = dma.hbm_to_vmem [thread:$0]  %s1107_s1, 2048, %s32_s25, [#allocation6], %s982_s11, %s982_s11, %s983_s12  }
  0x14   :  { %s984_s15 = smov [#allocation2]   ;;  %s985_s17 = smov [#allocation7]  }
  0x15   :  { %s22_s16 = sshll.u32 %s984_s15, 4  ;;  %s45_s18 = sshll.u32 %s985_s17, 4  ;;  %s23_s16 = int_to_ptr.vmem [resolvable:$true] %s22_s16  ;;  %s46_s18 = int_to_ptr.vmem [resolvable:$true] %s45_s18 }
  0x16   :  { %s885_s21 = scalar_lea.hbm %s1106_s0, 128 }
  0x17   :  { %p886_p8 = scmp.ne.s32.totalorder %s1106_s0, %s885_s21  ;;  %p889_p9 = scmp.lt.u32.totalorder %s885_s21, %s1106_s0 }
  0x19   :  { %p891_p10 = pnand %p889_p9, %p886_p8 }
  0x1b   :  { %894 = shalt.err (!%p891_p10)
}
  0x1c   :  { %s895_s1 = scalar_lea.vmem %s23_s16, 128  ;;  %p900_p12 = scmp.lt.s32.totalorder %s23_s16, %s23_s16 }
  0x1d   :  { %p896_p11 = scmp.ne.s32.totalorder %s23_s16, %s895_s1  ;;  %p901_p13 = scmp.lt.s32.totalorder %s895_s1, %s895_s1 }
  0x1f   :  { %p902_p0 = por %p901_p13, %p900_p12 }
  0x21   :  { %p903_p1 = pnand %p902_p0, %p896_p11 }
  0x23   :  { %906 = shalt.err (!%p903_p1)
}
  0x24   :  { %25 = dma.hbm_to_vmem [thread:$0]  %s1106_s0, 128, %s23_s16, [#allocation3]  }
  0x25   :  { %s907_s30 = scalar_lea.hbm %s1109_s3, 4096 }
  0x26   :  { %p908_p2 = scmp.ne.s32.totalorder %s1109_s3, %s907_s30  ;;  %p911_p3 = scmp.lt.u32.totalorder %s907_s30, %s1109_s3 }
  0x28   :  { %p913_p4 = pnand %p911_p3, %p908_p2 }
  0x2a   :  { %916 = shalt.err (!%p913_p4)
}
  0x2b   :  { %s917_s14 = scalar_lea.vmem %s46_s18, 4096  ;;  %p922_p6 = scmp.lt.s32.totalorder %s46_s18, %s46_s18 }
  0x2c   :  { %p918_p5 = scmp.ne.s32.totalorder %s46_s18, %s917_s14  ;;  %p923_p7 = scmp.lt.s32.totalorder %s917_s14, %s917_s14 }
  0x2e   :  { %p924_p8 = por %p923_p7, %p922_p6 }
  0x30   :  { %p925_p9 = pnand %p924_p8, %p918_p5 }
  0x32   :  { %928 = shalt.err (!%p925_p9)
}
  0x33   :  { %51 = dma.hbm_to_vmem [thread:$0]  %s1109_s3, 4096, %s46_s18, [#allocation6], %s982_s11, %s982_s11, %s983_s12  }
  0x34   :  { %s986_s16 = smov [#allocation8]   ;;  %s929_s21 = scalar_lea.hbm %s1111_s5, 2048 }
  0x35   :  { %s59_s17 = sshll.u32 %s986_s16, 4  ;;  %p930_p10 = scmp.ne.s32.totalorder %s1111_s5, %s929_s21  ;;  %s60_s17 = int_to_ptr.vmem [resolvable:$true] %s59_s17 }
  0x36   :  { %p933_p11 = scmp.lt.u32.totalorder %s929_s21, %s1111_s5 }
  0x38   :  { %p935_p12 = pnand %p933_p11, %p930_p10 }
  0x3a   :  { %938 = shalt.err (!%p935_p12)
}
  0x3b   :  { %s939_s1 = scalar_lea.vmem %s60_s17, 2048  ;;  %p944_p0 = scmp.lt.s32.totalorder %s60_s17, %s60_s17 }
  0x3c   :  { %p940_p13 = scmp.ne.s32.totalorder %s60_s17, %s939_s1  ;;  %p945_p1 = scmp.lt.s32.totalorder %s939_s1, %s939_s1 }
  0x3e   :  { %p946_p2 = por %p945_p1, %p944_p0 }
  0x40   :  { %p947_p3 = pnand %p946_p2, %p940_p13 }
  0x42   :  { %950 = shalt.err (!%p947_p3)
}
  0x43   :  { %s987_s3 = smov 64   ;;  %s988_s11 = smov 4  }
  0x44   :  { %65 = dma.hbm_to_vmem [thread:$0]  %s1111_s5, 2048, %s60_s17, [#allocation9], %s987_s3, %s987_s3, %s988_s11  }
  0x45   :  { %973 = dma.done.wait [#allocation3], 128  }
  0x46   :  { %974 = vsyncadd [#allocation3], 4294967168 }
  0x47   :  { %975 = dma.done.wait [#allocation6], 6144  }
  0x48   :  { %976 = vsyncadd [#allocation6], 4294961152 }
  0x49   :  { %977 = dma.done.wait [#allocation9], 2048  }
  0x4a   :  { %978 = vsyncadd [#allocation9], 4294965248  ;;  %v989_v0 = vmov 0   ;;  %v775_v1 = vld [vmem:[#allocation5 + $0x4] ss:$8 sps:$4 sm:$0xff]   ;;  %v81_v26 = vld [vmem:[#allocation2] sm:$0xff]  ;;  %v101_v63 = vlaneseq }
  0x4b   :  { %223 = vmatprep.mubr.bf16.mxu0 %v989_v0  ;;  %v777_v2 = vld [vmem:[#allocation5] ss:$8 sps:$4 sm:$0xff]   ;;  %191 = vmatprep.subr.bf16.mxu0 %v775_v1  ;;  %v778_v3 = vld [vmem:[#allocation5 + $0x14] ss:$8 sps:$4 sm:$0xff]   ;;  %v780_v4 = vld [vmem:[#allocation5 + $0x10] ss:$8 sps:$4 sm:$0xff]   ;;  %v82_v31 = vpack.c.bf16 %v81_v26, %v81_v26 }
  0x4c   :  { %192 = vmatpush1.bf16.msra.mxu0 %v777_v2  ;;  %v781_v5 = vld [vmem:[#allocation5 + $0x24] ss:$8 sps:$4 sm:$0xff]   ;;  %v783_v6 = vld [vmem:[#allocation5 + $0x20] ss:$8 sps:$4 sm:$0xff]   ;;  %v784_v7 = vld [vmem:[#allocation5 + $0x34] ss:$8 sps:$4 sm:$0xff]  }
  0x4d   :  { %193 = vmatprep.subr.bf16.mxu0 %v778_v3  ;;  %v786_v8 = vld [vmem:[#allocation5 + $0x30] ss:$8 sps:$4 sm:$0xff]   ;;  %v787_v9 = vld [vmem:[#allocation5 + $0x44] ss:$8 sps:$4 sm:$0xff]   ;;  %v801_v11 = vld [vmem:[#allocation7] ss:$8 sps:$4 sm:$0xff]  }
  0x4e   :  { %v799_v10 = vld [vmem:[#allocation7 + $0x4] ss:$8 sps:$4 sm:$0xff]   ;;  %v802_v12 = vld [vmem:[#allocation7 + $0x14] ss:$8 sps:$4 sm:$0xff]   ;;  %v789_v13 = vld [vmem:[#allocation5 + $0x40] ss:$8 sps:$4 sm:$0xff]  }
  0x4f   :  { %440 = vmatprep.subr.bf16.mxu1 %v799_v10  ;;  %v804_v14 = vld [vmem:[#allocation7 + $0x10] ss:$8 sps:$4 sm:$0xff]   ;;  %v805_v15 = vld [vmem:[#allocation7 + $0x24] ss:$8 sps:$4 sm:$0xff]   ;;  %v790_v16 = vld [vmem:[#allocation5 + $0x54] ss:$8 sps:$4 sm:$0xff]  }
  0x50   :  { %194 = vmatpush1.bf16.msra.mxu0 %v780_v4  ;;  %441 = vmatpush1.bf16.msra.mxu1 %v801_v11  ;;  %v792_v17 = vld [vmem:[#allocation5 + $0x50] ss:$8 sps:$4 sm:$0xff]   ;;  %v807_v18 = vld [vmem:[#allocation7 + $0x20] ss:$8 sps:$4 sm:$0xff]   ;;  %v808_v19 = vld [vmem:[#allocation7 + $0x34] ss:$8 sps:$4 sm:$0xff]  }
  0x51   :  { %195 = vmatprep.subr.bf16.mxu0 %v781_v5  ;;  %442 = vmatprep.subr.bf16.mxu1 %v802_v12  ;;  %v793_v20 = vld [vmem:[#allocation5 + $0x64] ss:$8 sps:$4 sm:$0xff]   ;;  %v795_v21 = vld [vmem:[#allocation5 + $0x60] ss:$8 sps:$4 sm:$0xff]   ;;  %v810_v22 = vld [vmem:[#allocation7 + $0x30] ss:$8 sps:$4 sm:$0xff]  }
  0x52   :  { %v811_v23 = vld [vmem:[#allocation7 + $0x44] ss:$8 sps:$4 sm:$0xff]   ;;  %v796_v24 = vld [vmem:[#allocation5 + $0x74] ss:$8 sps:$4 sm:$0xff]   ;;  %v798_v25 = vld [vmem:[#allocation5 + $0x70] ss:$8 sps:$4 sm:$0xff]  }
  0x53   :  { %v813_v27 = vld [vmem:[#allocation7 + $0x40] ss:$8 sps:$4 sm:$0xff]   ;;  %v814_v28 = vld [vmem:[#allocation7 + $0x54] ss:$8 sps:$4 sm:$0xff]   ;;  %v816_v29 = vld [vmem:[#allocation7 + $0x50] ss:$8 sps:$4 sm:$0xff]  }
  0x54   :  { %196 = vmatpush1.bf16.msra.mxu0 %v783_v6  ;;  %443 = vmatpush1.bf16.msra.mxu1 %v804_v14  ;;  %v817_v30 = vld [vmem:[#allocation7 + $0x64] ss:$8 sps:$4 sm:$0xff]   ;;  %v819_v32 = vld [vmem:[#allocation7 + $0x60] ss:$8 sps:$4 sm:$0xff]   ;;  %v820_v33 = vld [vmem:[#allocation7 + $0x74] ss:$8 sps:$4 sm:$0xff]  }
  0x55   :  { %197 = vmatprep.subr.bf16.mxu0 %v784_v7  ;;  %444 = vmatprep.subr.bf16.mxu1 %v805_v15  ;;  %v822_v34 = vld [vmem:[#allocation7 + $0x70] ss:$8 sps:$4 sm:$0xff]   ;;  %v823_v35 = vld [vmem:[#allocation7 + $0x84] ss:$8 sps:$4 sm:$0xff]   ;;  %v825_v36 = vld [vmem:[#allocation7 + $0x80] ss:$8 sps:$4 sm:$0xff]  }
  0x56   :  { %v826_v37 = vld [vmem:[#allocation7 + $0x94] ss:$8 sps:$4 sm:$0xff]   ;;  %v828_v38 = vld [vmem:[#allocation7 + $0x90] ss:$8 sps:$4 sm:$0xff]   ;;  %v829_v39 = vld [vmem:[#allocation7 + $0xa4] ss:$8 sps:$4 sm:$0xff]  }
  0x57   :  { %v831_v40 = vld [vmem:[#allocation7 + $0xa0] ss:$8 sps:$4 sm:$0xff]   ;;  %v832_v41 = vld [vmem:[#allocation7 + $0xb4] ss:$8 sps:$4 sm:$0xff]   ;;  %v834_v42 = vld [vmem:[#allocation7 + $0xb0] ss:$8 sps:$4 sm:$0xff]  }
  0x58   :  { %198 = vmatpush1.bf16.msra.mxu0 %v786_v8  ;;  %445 = vmatpush1.bf16.msra.mxu1 %v807_v18  ;;  %v835_v43 = vld [vmem:[#allocation7 + $0xc4] ss:$8 sps:$4 sm:$0xff]   ;;  %v837_v44 = vld [vmem:[#allocation7 + $0xc0] ss:$8 sps:$4 sm:$0xff]   ;;  %v838_v45 = vld [vmem:[#allocation7 + $0xd4] ss:$8 sps:$4 sm:$0xff]  }
  0x59   :  { %199 = vmatprep.subr.bf16.mxu0 %v787_v9  ;;  %446 = vmatprep.subr.bf16.mxu1 %v808_v19  ;;  %v840_v46 = vld [vmem:[#allocation7 + $0xd0] ss:$8 sps:$4 sm:$0xff]   ;;  %v841_v47 = vld [vmem:[#allocation7 + $0xe4] ss:$8 sps:$4 sm:$0xff]   ;;  %v843_v48 = vld [vmem:[#allocation7 + $0xe0] ss:$8 sps:$4 sm:$0xff]  }
  0x5a   :  { %v844_v49 = vld [vmem:[#allocation7 + $0xf4] ss:$8 sps:$4 sm:$0xff]   ;;  %v846_v50 = vld [vmem:[#allocation7 + $0xf0] ss:$8 sps:$4 sm:$0xff]   ;;  %v847_v51 = vld [vmem:[#allocation8 + $0x40] sm:$0xff]   ;;  %v102_v0 = vshrl.u32 %v101_v63, 7 }
  0x5b   :  { %v848_v52 = vld [vmem:[#allocation8] sm:$0xff]   ;;  %v849_v53 = vld [vmem:[#allocation8 + $0x48] sm:$0xff]   ;;  %v851_v55 = vld [vmem:[#allocation8 + $0x50] sm:$0xff]  }
  0x5c   :  { %200 = vmatpush1.bf16.msra.mxu0 %v789_v13  ;;  %447 = vmatpush1.bf16.msra.mxu1 %v810_v22  ;;  %v850_v54 = vld [vmem:[#allocation8 + $0x8] sm:$0xff]   ;;  %v852_v56 = vld [vmem:[#allocation8 + $0x10] sm:$0xff]   ;;  %v853_v57 = vld [vmem:[#allocation8 + $0x58] sm:$0xff]   ;;  %v103_v1 = vsub.s32 0, %v102_v0  ;;  %v107_v3 = vsub.s32 1, %v102_v0 }
  0x5d   :  { %201 = vmatprep.subr.bf16.mxu0 %v790_v16  ;;  %448 = vmatprep.subr.bf16.mxu1 %v811_v23  ;;  %v854_v58 = vld [vmem:[#allocation8 + $0x18] sm:$0xff]   ;;  %v855_v59 = vld [vmem:[#allocation8 + $0x60] sm:$0xff]   ;;  %v857_v61 = vld [vmem:[#allocation8 + $0x68] sm:$0xff]  }
  0x5e   :  { %v856_v60 = vld [vmem:[#allocation8 + $0x20] sm:$0xff]   ;;  %v858_v62 = vld [vmem:[#allocation8 + $0x28] sm:$0xff]   ;;  %v99_v2 = vld [vmem:[%s1108_s2] sm:$0x3] }
  0x5f   :  { %v104_v4 = vrot.slane %v99_v2, %v103_v1  ;;  %v108_v5 = vrot.slane %v99_v2, %v107_v3  ;;  %v859_v16 = vld [vmem:[#allocation8 + $0x70] sm:$0xff]   ;;  %v861_v18 = vld [vmem:[#allocation8 + $0x78] sm:$0xff]  }
  0x60   :  { %202 = vmatpush1.bf16.msra.mxu0 %v792_v17  ;;  %449 = vmatpush1.bf16.msra.mxu1 %v813_v27  ;;  %v860_v17 = vld [vmem:[#allocation8 + $0x30] sm:$0xff]   ;;  %v862_v19 = vld [vmem:[#allocation8 + $0x38] sm:$0xff]  }
  0x61   :  { %203 = vmatprep.subr.bf16.mxu0 %v793_v20  ;;  %450 = vmatprep.subr.bf16.mxu1 %v814_v28  ;;  %v268_v20 = vld [vmem:[%s1110_s4] sm:$0x3]  ;;  %s990_s4 = smov [#allocation10]  }
  0x62   :  { %v277_v22 = vrot.slane %v268_v20, %v107_v3  ;;  %s667_s30 = sshll.u32 %s990_s4, 4  ;;  %s668_s30 = int_to_ptr.vmem [resolvable:$true] %s667_s30 }
  0x63   :  { %s951_s8 = scalar_lea.vmem %s668_s30, 128  ;;  %p956_p5 = scmp.lt.s32.totalorder %s668_s30, %s668_s30 }
  0x64   :  { %204 = vmatpush1.bf16.msra.mxu0 %v795_v21  ;;  %451 = vmatpush1.bf16.msra.mxu1 %v816_v29  ;;  %v273_v21 = vrot.slane %v268_v20, %v103_v1  ;;  %p952_p4 = scmp.ne.s32.totalorder %s668_s30, %s951_s8  ;;  %p957_p6 = scmp.lt.s32.totalorder %s951_s8, %s951_s8 }
  0x65   :  { %205 = vmatprep.subr.bf16.mxu0 %v796_v24  ;;  %452 = vmatprep.subr.bf16.mxu1 %v817_v30 }
  0x66   :  { %p958_p7 = por %p957_p6, %p956_p5 }
  0x68   :  { %206 = vmatpush1.bf16.msra.mxu0 %v798_v25  ;;  %453 = vmatpush1.bf16.msra.mxu1 %v819_v32  ;;  %p959_p8 = pnand %p958_p7, %p952_p4 }
  0x69   :  { %454 = vmatprep.subr.bf16.mxu1 %v820_v33  ;;  %743 = vmatprep.subr.bf16.mxu0 %v847_v51 }
  0x6b   :  { %224 = vmatmul.mubr.bf16.vlgmr.msra.gmra.mrb[0].mxu0 %v82_v31 }
  0x6c   :  { %455 = vmatpush1.bf16.msra.mxu1 %v822_v34  ;;  %744 = vmatpush3.bf16.msra.mxu0 %v848_v52  ;;  %v726_v34 = vld [vmem:[%s1112_s6] ss:$0 sm:$0xff] }
  0x6d   :  { %456 = vmatprep.subr.bf16.mxu1 %v823_v35  ;;  %745 = vmatprep.subr.bf16.mxu0 %v849_v53 }
  0x70   :  { %457 = vmatpush1.bf16.msra.mxu1 %v825_v36  ;;  %746 = vmatpush3.bf16.msra.mxu0 %v850_v54 }
  0x71   :  { %458 = vmatprep.subr.bf16.mxu1 %v826_v37  ;;  %747 = vmatprep.subr.bf16.mxu0 %v851_v55 }
  0x74   :  { %459 = vmatpush1.bf16.msra.mxu1 %v828_v38  ;;  %748 = vmatpush3.bf16.msra.mxu0 %v852_v56 }
  0x75   :  { %460 = vmatprep.subr.bf16.mxu1 %v829_v39  ;;  %749 = vmatprep.subr.bf16.mxu0 %v853_v57 }
  0x78   :  { %461 = vmatpush1.bf16.msra.mxu1 %v831_v40  ;;  %750 = vmatpush3.bf16.msra.mxu0 %v854_v58 }
  0x79   :  { %462 = vmatprep.subr.bf16.mxu1 %v832_v41  ;;  %751 = vmatprep.subr.bf16.mxu0 %v855_v59 }
  0x7c   :  { %463 = vmatpush1.bf16.msra.mxu1 %v834_v42  ;;  %752 = vmatpush3.bf16.msra.mxu0 %v856_v60 }
  0x7d   :  { %464 = vmatprep.subr.bf16.mxu1 %v835_v43  ;;  %753 = vmatprep.subr.bf16.mxu0 %v857_v61 }
  0x80   :  { %465 = vmatpush1.bf16.msra.mxu1 %v837_v44  ;;  %754 = vmatpush3.bf16.msra.mxu0 %v858_v62 }
  0x81   :  { %466 = vmatprep.subr.bf16.mxu1 %v838_v45  ;;  %755 = vmatprep.subr.bf16.mxu0 %v859_v16 }
  0x84   :  { %467 = vmatpush1.bf16.msra.mxu1 %v840_v46  ;;  %756 = vmatpush3.bf16.msra.mxu0 %v860_v17 }
  0x85   :  { %468 = vmatprep.subr.bf16.mxu1 %v841_v47  ;;  %757 = vmatprep.subr.bf16.mxu0 %v861_v18 }
  0x88   :  { %469 = vmatpush1.bf16.msra.mxu1 %v843_v48  ;;  %758 = vmatpush3.bf16.msra.mxu0 %v862_v19 }
  0x89   :  { %470 = vmatprep.subr.bf16.mxu1 %v844_v49 }
  0x8c   :  { %471 = vmatpush1.bf16.msra.mxu1 %v846_v50 }
 0x13e   :  { %v225_v6 = vpop.f32.mrb[0].mxu0 }
 0x13f   :  { %v226_v7 = vadd.f32 %v225_v6, %v104_v4  ;;  %v227_v8 = vpop.f32.mrb[1].mxu0 }
 0x140   :  { %v228_v9 = vadd.f32 %v227_v8, %v108_v5  ;;  %v229_v10 = vpop.f32.mrb[2].mxu0 }
 0x141   :  { %v232_v11 = vmax.f32 %v226_v7, 0.0  ;;  %v230_v12 = vpop.f32.mrb[3].mxu0 }
 0x142   :  { %v233_v13 = vmax.f32 %v228_v9, 0.0 }
 0x143   :  { %v234_v15 = vpack.c.bf16 %v232_v11, %v232_v11 }
 0x144   :  { %v235_v14 = vpack.c.bf16 %v233_v13, %v233_v13 }
 0x146   :  { %472 = vmatprep.mubr.bf16.mxu1 %v235_v14 }
 0x147   :  { %473 = vmatmul.mubr.bf16.vlgmr.msra.gmra.mrb[0].mxu1 %v234_v15 }
 0x21a   :  { %v474_v23 = vpop.f32.mrb[0].mxu1 }
 0x21b   :  { %v475_v24 = vadd.f32 %v474_v23, %v273_v21  ;;  %v476_v25 = vpop.f32.mrb[1].mxu1 }
 0x21c   :  { %v477_v26 = vadd.f32 %v476_v25, %v277_v22  ;;  %v478_v27 = vpop.f32.mrb[2].mxu1 }
 0x21d   :  { %v481_v28 = vmax.f32 %v475_v24, 0.0  ;;  %v479_v29 = vpop.f32.mrb[3].mxu1 }
 0x21e   :  { %v482_v30 = vmax.f32 %v477_v26, 0.0 }
 0x21f   :  { %v483_v32 = vpack.c.bf16 %v481_v28, %v481_v28 }
 0x220   :  { %v484_v31 = vpack.c.bf16 %v482_v30, %v482_v30 }
 0x222   :  { %652 = vmatprep.mubr.bf16.mxu0 %v484_v31 }
 0x223   :  { %653 = vmatmul.mubr.bf16.vlgmr.msra.gmra.mrb[4].mxu0 %v483_v32 }
 0x2f6   :  { %v759_v33 = vpop.f32.mrb[4].mxu0 }
 0x2f7   :  { %v760_v35 = vpop.f32.mrb[5].mxu0 }
 0x2f8   :  { %v761_v36 = vadd.f32 %v760_v35, %v759_v33  ;;  %v762_v37 = vpop.f32.mrb[6].mxu0 }
 0x2f9   :  { %v763_v38 = vpop.f32.mrb[7].mxu0 }
 0x2fa   :  { %v655_v39 = vadd.f32 %v761_v36, %v726_v34 }
 0x2fc   :  { %660 = vst [vmem:[#allocation10] sm:$0xff] %v655_v39 }
 0x2fd   :  { %962 = shalt.err (!%p959_p8)
}
 0x2fe   :  { %s963_s6 = scalar_lea.hbm %s1113_s7, 128 }
 0x2ff   :  { %p964_p9 = scmp.ne.s32.totalorder %s1113_s7, %s963_s6  ;;  %p967_p10 = scmp.lt.u32.totalorder %s963_s6, %s1113_s7 }
 0x301   :  { %p969_p11 = pnand %p967_p10, %p964_p9 }
 0x303   :  { %972 = shalt.err (!%p969_p11)
}
 0x304   :  { %670 = dma.vmem_to_hbm [thread:$0]  %s668_s30, 128, %s1113_s7, [#allocation4]  }
 0x305   :  { %979 = dma.done.wait [#allocation4], 128  }
 0x306   :  { %980 = vsyncadd [#allocation4], 4294967168 }
 0x307   :  { %674 = vsyncpa [#allocation3], 1 }
 0x308   :  { %675 = vsyncpa [#allocation6], 1 }
 0x309   :  { %676 = vsyncpa [#allocation9], 1 }
 0x30a   :  { %677 = vsyncpa [#allocation4], 1 }

</bundles_post_ra>
